<compile_context>
chip_gen: v7x
topology: tpu7x:2x2x1
jax: 0.10.0
libtpu: 0.0.40
codegen_flags: <defaults>
</compile_context>

<pallas_src>
import functools

import jax
import jax.numpy as jnp
from jax.experimental import pallas as pl
from jax.experimental.pallas import tpu as pltpu


# -----------------------------------------------------------------------------
# Compression (parameter setup, plain JAX -- mirrors AdvancedQuantizedLinear.__init__)
# -----------------------------------------------------------------------------
def _apply_magnitude_pruning(weight: jnp.ndarray, pruning_ratio: float) -> jnp.ndarray:
    """torch.kthvalue-based magnitude pruning (strict > threshold keeps weight)."""
    if pruning_ratio <= 0:
        return weight
    importance = jnp.abs(weight)
    flat = importance.reshape(-1)
    k = int(flat.shape[0] * pruning_ratio)
    if k <= 0:
        return weight
    threshold = jnp.sort(flat)[k - 1]          # k-th smallest (torch.kthvalue, 1-indexed)
    mask = (importance > threshold).astype(weight.dtype)
    return weight * mask


def _symmetric_quantization(weight: jnp.ndarray, bits: int) -> jnp.ndarray:
    n_levels = 2 ** bits
    max_val = jnp.max(jnp.abs(weight))
    safe_max = jnp.where(max_val > 0, max_val, 1.0)
    scale = safe_max / (n_levels // 2 - 1)
    quantized = jnp.clip(jnp.round(weight / scale), -(n_levels // 2), n_levels // 2 - 1)
    return jnp.where(max_val > 0, quantized * scale, weight)


def _uniform_quantization(weight: jnp.ndarray, bits: int) -> jnp.ndarray:
    w_min = jnp.min(weight)
    w_max = jnp.max(weight)
    n_levels = 2 ** bits
    rng = w_max - w_min
    safe_rng = jnp.where(rng > 0, rng, 1.0)    # safe divide (avoid inf/nan in untaken branch)
    scale = safe_rng / (n_levels - 1)
    quantized = jnp.round((weight - w_min) / scale) * scale + w_min
    return jnp.where(w_max > w_min, quantized, weight)


def _apply_quantization(weight: jnp.ndarray, bits: int) -> jnp.ndarray:
    if bits >= 16:
        return weight
    if bits == 1:
        alpha = jnp.mean(jnp.abs(weight))
        return jnp.sign(weight) * alpha
    if bits <= 4:
        return _symmetric_quantization(weight, bits)
    return _uniform_quantization(weight, bits)


def apply_compression(weight: jnp.ndarray, bits: int, pruning_ratio: float) -> jnp.ndarray:
    """Mirrors AdvancedQuantizedLinear._apply_compression (weight is [out, in])."""
    w = weight
    if pruning_ratio > 0:
        w = _apply_magnitude_pruning(w, pruning_ratio)
    if bits < 16:
        w = _apply_quantization(w, bits)
    return w


def _round_up(x: int, m: int) -> int:
    return (x + m - 1) // m * m


def prepare_params_for_kernel(weight_out_in: jnp.ndarray,
                              bias: jnp.ndarray | None = None,
                              *, tn: int = 512, tk: int = 1024,
                              weight_dtype=jnp.bfloat16):
    """One-time layout plumbing at setup time (analogous to register_buffer).

    [out, in] -> [in, out], cast to bf16 (native MXU input dtype), pad K/N once
    to multiples of the chosen (tk, tn) so the jitted forward never touches the
    weight in HBM again. Returns (w_t_padded, bias_padded, forward_kwargs).

    TODO(synk): store int8 (v5e/v6e) or fp8-e4m3 (v7x) + scale and dequantize
    in-kernel instead of bf16 for further weight-HBM savings.
    """
    N, K = weight_out_in.shape
    w_t = jnp.transpose(weight_out_in).astype(weight_dtype)      # [K, N]

    n_r = _round_up(N, 128)
    k_r = _round_up(K, 128)
    # Keep >= 2 blocks on the parallel N axis where possible (v7x has 2 TCs).
    tn = min(tn, max(128, _round_up(n_r // 2, 128)) if n_r >= 256 else n_r)
    tk = min(tk, k_r)

    N_pad = _round_up(N, tn)
    K_pad = _round_up(K, tk)
    if (K_pad, N_pad) != (K, N):
        w_t = jnp.pad(w_t, ((0, K_pad - K), (0, N_pad - N)))     # zero K-pad => adds 0

    b = None
    if bias is not None:
        b = bias.astype(jnp.float32).reshape(1, N)
        if N_pad != N:
            b = jnp.pad(b, ((0, 0), (0, N_pad - N)))

    return w_t, b, dict(n_out=N, tn=tn, tk=tk)


# -----------------------------------------------------------------------------
# Pallas kernel: y = x @ W_t + b    (W_t = weight.T, shape [K_pad, N_pad], bf16)
# -----------------------------------------------------------------------------
def _make_linear_kernel(has_bias: bool, out_is_acc: bool):
    """Kernel factory; static variants for bias / direct-f32-output accumulation."""

    def kernel(*refs):
        if has_bias:
            x_ref, w_ref, b_ref = refs[0], refs[1], refs[2]
            rest = refs[3:]
        else:
            x_ref, w_ref = refs[0], refs[1]
            b_ref = None
            rest = refs[2:]
        if out_is_acc:
            (o_ref,) = rest          # f32 output block is resident across k axis
            acc_ref = o_ref
        else:
            o_ref, acc_ref = rest    # VMEM f32 scratch accumulator

        @pl.when(pl.program_id(2) == 0)
        def _init():
            acc_ref[...] = jnp.zeros_like(acc_ref)

        # bf16 x bf16 MXU matmul, f32 accumulation.
        acc_ref[...] += jnp.dot(
            x_ref[...].astype(jnp.bfloat16),
            w_ref[...].astype(jnp.bfloat16),
            preferred_element_type=jnp.float32)

        @pl.when(pl.program_id(2) == pl.num_programs(2) - 1)
        def _finalize():
            r = acc_ref[...]
            if b_ref is not None:
                r = r + b_ref[...].astype(jnp.float32)
            o_ref[...] = r.astype(o_ref.dtype)

    return kernel


@functools.partial(jax.jit, static_argnames=("n_out", "tm", "tn", "tk"))
def quantized_linear_forward(x, w_t, bias=None, *, n_out, tm=256, tn=128, tk=1024):
    """F.linear(x, weight, bias) with the matmul in a Pallas TPU kernel.

    x:    [..., K]            activations (any leading dims; flattened to M rows)
    w_t:  [K_pad, N_pad] bf16 pre-transposed / pre-padded compressed weight
    bias: [1, N_pad] f32 or None (pre-padded at setup)
    returns [..., n_out]
    """
    *lead, K = x.shape
    K_pad, N_pad = w_t.shape
    assert K <= K_pad and K_pad % tk == 0 and N_pad % tn == 0

    M = 1
    for d in lead:
        M *= d
    x2d = x.reshape(M, K)

    tm = min(tm, _round_up(M, 16))             # multiple of 16 for bf16 sublane packing
    M_pad = _round_up(M, tm)
    if (M_pad, K_pad) != (M, K):
        x2d = jnp.pad(x2d, ((0, M_pad - M), (0, K_pad - K)))   # zero K-pad adds 0

    has_bias = bias is not None
    out_is_acc = jnp.dtype(x.dtype) == jnp.dtype(jnp.float32)

    grid = (M_pad // tm, N_pad // tn, K_pad // tk)

    in_specs = [
        pl.BlockSpec((tm, tk), lambda i, j, k: (i, k)),   # activations
        pl.BlockSpec((tk, tn), lambda i, j, k: (k, j)),   # pre-transposed bf16 weight
    ]
    inputs = [x2d, w_t]
    if has_bias:
        in_specs.append(pl.BlockSpec((1, tn), lambda i, j, k: (0, j)))
        inputs.append(bias)

    scratch_shapes = [] if out_is_acc else [pltpu.VMEM((tm, tn), jnp.float32)]

    x_item = jnp.dtype(x.dtype).itemsize
    w_item = jnp.dtype(w_t.dtype).itemsize
    cost = pl.CostEstimate(
        flops=2 * M_pad * N_pad * K_pad,
        transcendentals=0,
        bytes_accessed=(M_pad * K_pad * x_item * (N_pad // tn)     # x revisited per N block
                        + K_pad * N_pad * w_item * (M_pad // tm)   # w revisited per M block
                        + (N_pad * 4 if has_bias else 0)
                        + M_pad * N_pad * x_item),
    )

    out = pl.pallas_call(
        _make_linear_kernel(has_bias, out_is_acc),
        out_shape=jax.ShapeDtypeStruct((M_pad, N_pad), x.dtype),
        grid_spec=pltpu.PrefetchScalarGridSpec(
            num_scalar_prefetch=0,
            grid=grid,
            in_specs=in_specs,
            out_specs=pl.BlockSpec((tm, tn), lambda i, j, k: (i, j)),
            scratch_shapes=scratch_shapes,
        ),
        compiler_params=pltpu.CompilerParams(
            dimension_semantics=("parallel", "parallel", "arbitrary"),
            vmem_limit_bytes=32 * 1024 * 1024),
        cost_estimate=cost,
    )(*inputs)

    out = out[:M, :n_out]
    return out.reshape(*lead, n_out)


# -----------------------------------------------------------------------------
# Demo / self-test
# -----------------------------------------------------------------------------
if __name__ == "__main__":
    batch, seq = 2, 8
    in_features, out_features = 128, 256
    bits = 8                # config.quantization_bits -> uniform quantization path
    pruning_ratio = 0.2     # config.pruning_ratios    -> magnitude pruning path

    key = jax.random.PRNGKey(0)
    kx, kw, kb = jax.random.split(key, 3)

    x = jax.random.normal(kx, (batch, seq, in_features), dtype=jnp.float32)
    original_weight = jax.random.normal(
        kw, (out_features, in_features), dtype=jnp.float32) * 0.05
    original_bias = jax.random.normal(kb, (out_features,), dtype=jnp.float32) * 0.01

    # __init__: compress once (prune -> quantize), transpose/cast/pad once.
    compressed_weight = apply_compression(original_weight, bits, pruning_ratio)
    w_t, b_pad, fwd_kwargs = prepare_params_for_kernel(compressed_weight, original_bias)

    # forward: F.linear(x, compressed_weight, bias) via Pallas.
    y = quantized_linear_forward(x, w_t, b_pad, **fwd_kwargs)
    y = jax.block_until_ready(y)

    # Reference in f32. Kernel feeds bf16 to the MXU (f32 accumulation), so
    # tolerances are loosened accordingly; quantization error (8 bits) already
    # dwarfs the bf16 rounding.
    y_ref = x @ compressed_weight.T + original_bias
    assert y.shape == (batch, seq, out_features)
    rel_err = jnp.linalg.norm(y - y_ref) / jnp.linalg.norm(y_ref)
    assert rel_err < 1e-2, f"relative error too large: {rel_err}"
    assert jnp.allclose(y, y_ref, atol=5e-2, rtol=5e-2)

    # Ragged-shape + no-bias path (not multiples of 8/128): padding + variant logic.
    x_r = jax.random.normal(kx, (3, 5, 100), dtype=jnp.float32)
    w_r = apply_compression(
        jax.random.normal(kw, (130, 100), dtype=jnp.float32) * 0.05, 4, 0.1)
    w_t_r, _, kw_r = prepare_params_for_kernel(w_r, None)
    y_r = quantized_linear_forward(x_r, w_t_r, None, **kw_r)
    y_r = jax.block_until_ready(y_r)
    y_r_ref = x_r @ w_r.T
    assert y_r.shape == (3, 5, 130)
    rel_err_r = jnp.linalg.norm(y_r - y_r_ref) / (jnp.linalg.norm(y_r_ref) + 1e-12)
    assert rel_err_r < 1e-2, f"relative error too large: {rel_err_r}"
    assert jnp.allclose(y_r, y_r_ref, atol=5e-2, rtol=5e-2)

    print("KERNEL_OK")
</pallas_src>

<mosaic_0001>
module attributes {stable_mosaic.version = 11 : i64} {
  func.func @kernel(%arg0: i32, %arg1: i32, %arg2: i32, %arg3: memref<16x128xf32, #tpu.memory_space<vmem>>, %arg4: memref<128x128xbf16, #tpu.memory_space<vmem>>, %arg5: memref<1x128xf32, #tpu.memory_space<vmem>>, %arg6: memref<16x128xf32, #tpu.memory_space<vmem>>) attributes {dimension_semantics = [#tpu.dimension_semantics<parallel>, #tpu.dimension_semantics<parallel>, #tpu.dimension_semantics<arbitrary>], iteration_bounds = array<i64: 1, 2, 1>, scalar_prefetch = 0 : i64, scratch_operands = 0 : i64, tpu.core_type = #tpu.core_type<tc>, window_params = [{transform_indices = @transform_0, window_bounds = array<i64: 16, 128>}, {transform_indices = @transform_1, window_bounds = array<i64: 128, 128>}, {transform_indices = @transform_2, window_bounds = array<i64: 1, 128>}, {transform_indices = @transform_3, window_bounds = array<i64: 16, 128>}]} {
    %c0_i32 = arith.constant 0 : i32
    %0 = arith.cmpi eq, %arg2, %c0_i32 : i32
    %1 = arith.extui %0 : i1 to i32
    %c0_i32_0 = arith.constant 0 : i32
    %2 = arith.cmpi ne, %1, %c0_i32_0 : i32
    scf.if %2 {
      %cst_10 = arith.constant 0.000000e+00 : f32
      %13 = vector.broadcast %cst_10 : f32 to vector<16x128xf32>
      %c0_11 = arith.constant 0 : index
      %c0_12 = arith.constant 0 : index
      %14 = vector.load %arg6[%c0_11, %c0_12] : memref<16x128xf32, #tpu.memory_space<vmem>>, vector<16x128xf32>
      tpu.vector_store %arg6[%c0_11, %c0_12], %13 {strides = array<i32>} : memref<16x128xf32, #tpu.memory_space<vmem>>, vector<16x128xf32>,
    } else {
    }
    %c0 = arith.constant 0 : index
    %c0_1 = arith.constant 0 : index
    %3 = vector.load %arg6[%c0, %c0_1] : memref<16x128xf32, #tpu.memory_space<vmem>>, vector<16x128xf32>
    %c0_2 = arith.constant 0 : index
    %c0_3 = arith.constant 0 : index
    %4 = vector.load %arg3[%c0_2, %c0_3] : memref<16x128xf32, #tpu.memory_space<vmem>>, vector<16x128xf32>
    %5 = arith.truncf %4 : vector<16x128xf32> to vector<16x128xbf16>
    %c0_4 = arith.constant 0 : index
    %c0_5 = arith.constant 0 : index
    %6 = vector.load %arg4[%c0_4, %c0_5] : memref<128x128xbf16, #tpu.memory_space<vmem>>, vector<128x128xbf16>
    %cst = arith.constant dense<0.000000e+00> : vector<16x128xf32>
    %7 = tpu.matmul %5, %6, %cst {dimension_numbers = #tpu.dot_dimension_numbers<[1], [0], [0], [1], [0, 0, 1, 1], [], []>} : vector<16x128xbf16>, vector<128x128xbf16>, vector<16x128xf32> -> vector<16x128xf32>
    %8 = arith.addf %3, %7 : vector<16x128xf32>
    %c0_6 = arith.constant 0 : index
    %c0_7 = arith.constant 0 : index
    %9 = vector.load %arg6[%c0_6, %c0_7] : memref<16x128xf32, #tpu.memory_space<vmem>>, vector<16x128xf32>
    tpu.vector_store %arg6[%c0_6, %c0_7], %8 {strides = array<i32>} : memref<16x128xf32, #tpu.memory_space<vmem>>, vector<16x128xf32>,
    %c0_i32_8 = arith.constant 0 : i32
    %10 = arith.cmpi eq, %arg2, %c0_i32_8 : i32
    %11 = arith.extui %10 : i1 to i32
    %c0_i32_9 = arith.constant 0 : i32
    %12 = arith.cmpi ne, %11, %c0_i32_9 : i32
    scf.if %12 {
      %c0_10 = arith.constant 0 : index
      %c0_11 = arith.constant 0 : index
      %13 = vector.load %arg6[%c0_10, %c0_11] : memref<16x128xf32, #tpu.memory_space<vmem>>, vector<16x128xf32>
      %c0_12 = arith.constant 0 : index
      %c0_13 = arith.constant 0 : index
      %14 = vector.load %arg5[%c0_12, %c0_13] : memref<1x128xf32, #tpu.memory_space<vmem>>, vector<1x128xf32>
      %15 = vector.broadcast %14 : vector<1x128xf32> to vector<16x128xf32>
      %16 = arith.addf %13, %15 : vector<16x128xf32>
      %c0_14 = arith.constant 0 : index
      %c0_15 = arith.constant 0 : index
      %17 = vector.load %arg6[%c0_14, %c0_15] : memref<16x128xf32, #tpu.memory_space<vmem>>, vector<16x128xf32>
      tpu.vector_store %arg6[%c0_14, %c0_15], %16 {strides = array<i32>} : memref<16x128xf32, #tpu.memory_space<vmem>>, vector<16x128xf32>,
    } else {
    }
    return
  }
  func.func @transform_0(%arg0: i32, %arg1: i32, %arg2: i32) -> (i32, i32) {
    %c0_i32 = arith.constant 0 : i32
    return %arg0, %arg2 : i32, i32
  }
  func.func @transform_1(%arg0: i32, %arg1: i32, %arg2: i32) -> (i32, i32) {
    %c0_i32 = arith.constant 0 : i32
    return %arg2, %arg1 : i32, i32
  }
  func.func @transform_2(%arg0: i32, %arg1: i32, %arg2: i32) -> (i32, i32) {
    %c0_i32 = arith.constant 0 : i32
    %c0_i32_0 = arith.constant 0 : i32
    return %c0_i32, %arg1 : i32, i32
  }
  func.func @transform_3(%arg0: i32, %arg1: i32, %arg2: i32) -> (i32, i32) {
    %c0_i32 = arith.constant 0 : i32
    return %arg0, %arg1 : i32, i32
  }
}

</mosaic_0001>

<bundles_post_ra>
// kernel: quantized_linear_forward.1
= control target key start
LH: loop header
LB: loop body
LE: loop exit
PB: predicated region body
PF: predicated region fallthrough
CT: control target
= control target key end

     0   :  { %8 = vsyncpa [#allocation3], 0  ;;  %s1073_s0 = inlined_call_operand.hbm [shape: f32[16,128], index: 0, kind: input, shape index: {}]   ;;  %s1074_s1 = inlined_call_operand.hbm [shape: bf16[128,256], index: 1, kind: input, shape index: {}]   ;;  %s1075_s2 = inlined_call_operand.vmem [shape: f32[1,256], index: 2, kind: input, shape index: {}]   ;;  %s1076_s3 = inlined_call_operand.hbm [shape: f32[16,256], index: 3, kind: output, shape index: {}]  }
   0x1   :  { %9 = vsyncpa [#allocation6], 0 }
   0x2   :  { %11 = vsyncpa [#allocation6 + $0x1], 0 }
   0x3   :  { %12 = vsyncpa [#allocation4], 0 }
   0x4   :  { %14 = vsyncpa [#allocation4 + $0x1], 0  ;;  %s844_s12 = smov 0   ;;  %s846_s13 = smov 0  }
   0x5   :  { %s848_s14 = smov 0   ;;  %s850_s15 = smov 0  }
   0x6   :  { %s852_s16 = smov 0   ;;  %s854_s17 = smov 0  }
   0x7 LB: > { %s523_s18 = sadd.s32 4294967295, %s810_s17   ;;  %s524_s19 = sadd.s32 4294967294, %s810_s17   ;;  %s810_s17 = sphi %s854_s17, %s20_s17   ;;  %s806_s16 = sphi %s852_s16, %s1102_s16   ;;  %s802_s15 = sphi %s850_s15, %s1101_s15   ;;  %s798_s14 = sphi %s848_s14, %s1100_s14   ;;  %s794_s13 = sphi %s846_s13, %s1099_s13   ;;  %s790_s12 = sphi %s844_s12, %s1098_s12  }
   0x8   : > { %p83_p0 = scmp.ne.s32.totalorder %s798_s14, %s794_s13  ;;  %p84_p1 = scmp.eq.s32.totalorder %s810_s17, 0 }
   0x9   : > { %p89_p2 = scmp.ne.s32.totalorder %s794_s13, %s790_s12  ;;  %p881_p3 = scmp.eq.s32.totalorder %s523_s18, 0 }
   0xa   : > { %p885_p4 = por %p84_p1, %p83_p0  ;;  %p141_p5 = scmp.eq.s32.totalorder %s523_s18, 1 }
   0xb   : > { %s1083_s20 = scalar_select %p881_p3, 1, 0 }
   0xc   : > { %p891_p6 = por %p881_p3, %p89_p2  ;;  %p147_p7 = scmp.eq.s32.totalorder %s524_s19, 1 }
   0xd   : > { %p895_p8 = por %p141_p5, %p83_p0  ;;  %p525_p9 = scmp.ge.s32.totalorder %s810_s17, 1 }
   0xe   : > { %s1085_s22 = scalar_select %p891_p6, 1, 0 }
   0xf   : > { %s1086_s23 = scalar_select %p895_p8, 1, 0 }
  0x10   : > { %p900_p10 = por %p147_p7, %p89_p2  ;;  %p154_p11 = scmp.lt.s32.totalorder %s810_s17, 3 }
  0x11   : > { %s812_s26 = smov [#allocation2]   ;;  %p597_p1 = scmp.lt.s32.totalorder %s810_s17, 2 }
  0x12   : > { %s1087_s24 = scalar_select %p900_p10, 1, 0 }
  0x13   : > { %p905_p12 = pnand %p525_p9, %p154_p11  ;;  %s170_s27 = sshll.u32 %s812_s26, 4  ;;  %s909_s27 = int_to_ptr.vmem [resolvable:$true] %s170_s27 }
  0x14   : > { %p923_p2 = pnand %p597_p1, %p885_p4  ;;  %s35_s30 = sadd.s32 1, %s806_s16 }
  0x15   : > { %s1088_s25 = scalar_select %p905_p12, 1, 0 }
  0x16   : > { %p584_p13 = pneg %p905_p12  ;;  %s666_s6 = scalar_lea.hbm %s1073_s0, 256 }
  0x17   : > { %s1090_s29 = scalar_select %p923_p2, 1, 0 }
  0x18   : > { %p917_p5 = pnand %p584_p13, %p881_p3  ;;  %p667_p7 = scmp.ne.s32.totalorder %s1073_s0, %s666_s6 }
  0x19   : > { %p673_p4 = scmp.lt.u32.totalorder %s666_s6, %s1073_s0 }
  0x1a   : > { %p668_p9 = pneg %p917_p5 }
  0x1c   : > { %p669_p11 = pnand %p668_p9, %p667_p7 }
  0x1e   : > { %p670_p13 = pneg %p669_p11 }
  0x20   : > { %p675_p1 = pnand %p673_p4, %p670_p13 }
  0x22   : > { %678 = shalt.err (!%p675_p1)
}
  0x23   : > { %s679_s11 = scalar_lea.vmem %s909_s27, 256  ;;  %p687_p6 = scmp.lt.s32.totalorder %s909_s27, %s909_s27 }
  0x24   : > { %p680_p0 = scmp.ne.s32.totalorder %s909_s27, %s679_s11  ;;  %p688_p3 = scmp.lt.s32.totalorder %s679_s11, %s679_s11 }
  0x26   : > { %p682_p10 = pnand %p680_p0, %p668_p9  ;;  %p689_p12 = por %p688_p3, %p687_p6 }
  0x28   : > { %p683_p8 = pneg %p682_p10 }
  0x2a   : > { %p690_p2 = pnand %p689_p12, %p683_p8 }
  0x2c   : > { %693 = shalt.err (!%p690_p2)
}
  0x2d   : > { %s813_s18 = smov 128   ;;  %s814_s19 = smov 8  }
  0x2e   : > { %587 = dma.hbm_to_vmem [thread:$0]  (!%p917_p5), %s1073_s0, 256, %s909_s27, [#allocation3], %s813_s18, %s813_s18, %s814_s19  }
  0x2f   : > { %p37_p10 = scmp.ge.s32.totalorder %s35_s30, 2  ;;  %s76_s4 = sadd.s32 1, %s798_s14 }
  0x30   : > { %s184_s5 = sand.u32 1, %s798_s14   ;;  %s529_s8 = sshll.u32 %s806_s16, 6 }
  0x31   : > { %s1104_s30 = smov (%p37_p10, %s35_s30), 0  ;;  %s528_s6 = sshll.u32 %s184_s5, 6 }
  0x32   : > { %s72_s7 = ssub.s32 %s806_s16, %s1104_s30  ;;  %s961_s10 = scalar_lea.hbm %s1074_s1, %s529_s8 }
  0x33   : > { %p74_p3 = scmp.eq.s32.totalorder %s72_s7, 0  ;;  %s188_s27 = scalar_lea.vmem [#allocation5], %s528_s6 }
  0x34   : > { %s197_s11 = sshll.u32 %s188_s27, 4  ;;  %s968_s21 = scalar_lea.sflag [#allocation6], %s184_s5  ;;  %s966_s11 = int_to_ptr.vmem [resolvable:$true] %s197_s11 }
  0x35   : > { %s964_s19 = scalar_select %p74_p3, %s798_s14, %s76_s4  }
  0x36   : > { %s694_s26 = scalar_lea.hbm %s961_s10, 1024  ;;  %p1091_p8 = scmp.ne.s32.totalorder %s1090_s29, 0 }
  0x37   : > { %p695_p6 = scmp.ne.s32.totalorder %s961_s10, %s694_s26  ;;  %s699_s9 = scalar_lea.hbm %s1074_s1, 2048 }
  0x38   : > { %p696_p12 = pneg %p1091_p8  ;;  %p700_p2 = scmp.lt.u32.totalorder %s961_s10, %s1074_s1 }
  0x39   : > { %p701_p7 = scmp.lt.u32.totalorder %s699_s9, %s694_s26  ;;  %p703_p11 = scmp.lt.u32.totalorder %s694_s26, %s961_s10 }
  0x3a   : > { %p697_p0 = pnand %p696_p12, %p695_p6 }
  0x3b   : > { %p702_p9 = por %p701_p7, %p700_p2 }
  0x3c   : > { %p698_p5 = pneg %p697_p0 }
  0x3d   : > { %p704_p13 = por %p703_p11, %p702_p9 }
  0x3f   : > { %p705_p4 = pnand %p704_p13, %p698_p5 }
  0x41   : > { %708 = shalt.err (!%p705_p4)
}
  0x42   : > { %s709_s4 = scalar_lea.vmem %s966_s11, 1024  ;;  %s815_s5 = smov [#allocation5]  }
  0x43   : > { %p710_p1 = scmp.ne.s32.totalorder %s966_s11, %s709_s4  ;;  %s714_s27 = sshll.u32 %s815_s5, 4  ;;  %s715_s27 = int_to_ptr.vmem [resolvable:$false] %s714_s27 }
  0x44   : > { %s716_s7 = scalar_lea.vmem %s715_s27, 2048  ;;  %p717_p6 = scmp.lt.s32.totalorder %s966_s11, %s715_s27 }
  0x45   : > { %p712_p10 = pnand %p710_p1, %p696_p12  ;;  %p718_p0 = scmp.lt.s32.totalorder %s716_s7, %s709_s4 }
  0x47   : > { %p713_p3 = pneg %p712_p10  ;;  %p719_p2 = por %p718_p0, %p717_p6 }
  0x49   : > { %p720_p7 = pnand %p719_p2, %p713_p3 }
  0x4b   : > { %723 = shalt.err (!%p720_p7)
}
  0x4c   : > { %s816_s26 = smov 64   ;;  %s817_s8 = smov 4  }
  0x4d   : > { %591 = dma.hbm_to_vmem [thread:$0]  (!%p1091_p8), %s961_s10, 1024, %s966_s11, %s968_s21, %s813_s18, %s816_s26, %s817_s8  }
  0x4e   : > { %p1092_p12 = scmp.ne.s32.totalorder %s1088_s25, 0 }
  0x4f   : > { %p1093_p5 = scmp.ne.s32.totalorder (!%p1092_p12), %s1083_s20, 0 }
  0x50   : > { %215 = sbr.rel (%p1092_p12) target bundleno = 357 (0x165), region = 32 }
  0x57   : > { %777 = dma.done.wait (%p1093_p5), [#allocation3], 256  }
  0x58   : > { %779 = vsyncadd (%p1093_p5), [#allocation3], 4294967040  ;;  %s1004_s9 = sand.u32 1, %s794_s13   ;;  %p1094_p9 = scmp.ne.s32.totalorder %s1085_s22, 0 }
  0x59   : > { %s532_s6 = sshll.u32 %s1004_s9, 6  ;;  %s222_s28 = scalar_lea.sflag [#allocation6], %s1004_s9 }
  0x5a   : > { %s225_s29 = scalar_lea.vmem [#allocation5], %s532_s6 }
  0x5b   : > { %781 = dma.done.wait (%p1094_p9), %s222_s28, 1024  }
  0x5c   : > { %783 = vsyncadd (%p1094_p9), %s222_s28, 4294966272  ;;  %v818_v0 = vmov 0.0   ;;  %vm819_vm0 = vmmov 0   ;;  %v658_v1 = vld [vmem:[%s225_s29] sm:$0xff]   ;;  %v659_v2 = vld [vmem:[%s225_s29 + $0x8] sm:$0xff]   ;;  %p253_p8 = scmp.lt.s32.totalorder %s802_s15, 1 }
  0x5d   : > { %556 = vmatprep.subr.bf16.mxu0 %v818_v0  ;;  %572 = vmatprep.mubr.msk.bf16.mxu0 %vm819_vm0, %v818_v0  ;;  %v660_v3 = vld [vmem:[%s225_s29 + $0x10] sm:$0xff]   ;;  %v661_v4 = vld [vmem:[%s225_s29 + $0x18] sm:$0xff]   ;;  %v662_v5 = vld [vmem:[%s225_s29 + $0x20] sm:$0xff]   ;;  %s533_s22 = sshll.u32 %s1004_s9, 4  ;;  %s544_s11 = sshll.u32 %s802_s15, 7 }
  0x5e   : > { %557 = vmatpush3.bf16.msra.mxu0 %v658_v1  ;;  %v663_v6 = vld [vmem:[%s225_s29 + $0x28] sm:$0xff]   ;;  %v664_v7 = vld [vmem:[%s225_s29 + $0x30] sm:$0xff]   ;;  %v665_v8 = vld [vmem:[%s225_s29 + $0x38] sm:$0xff]   ;;  %s254_s20 = scalar_select %p253_p8, %s802_s15, 1 }
  0x5f   : > { %558 = vmatprep.subr.bf16.mxu0 %v818_v0  ;;  %v266_v9 = vld [vmem:[#allocation2] sm:$0xff]  ;;  %v267_v10 = vld [vmem:[#allocation2 + $0x8] sm:$0xff]  ;;  %s250_s21 = scalar_lea.vmem [#allocation7], %s533_s22  ;;  %s1022_s7 = scalar_lea.hbm %s1076_s3, %s544_s11 }
  0x60   : > { %v268_v11 = vpack.c.bf16 %v267_v10, %v266_v9  ;;  %s255_s10 = scalar_lea.vmem %s1075_s2, %s254_s20  ;;  %s410_s4 = sshll.u32 %s250_s21, 4  ;;  %s1024_s4 = int_to_ptr.vmem [resolvable:$true] %s410_s4 }
  0x61   : > { %v542_v13 = vld [vmem:[%s255_s10] ss:$0 sm:$0xff]  ;;  %s395_s15 = scalar_lea.sflag [#allocation4], %s1004_s9  ;;  %s724_s26 = scalar_lea.vmem %s1024_s4, 256 }
  0x62   : > { %559 = vmatpush3.bf16.msra.mxu0 %v659_v2  ;;  %p725_p11 = scmp.ne.s32.totalorder %s1024_s4, %s724_s26  ;;  %p1095_p13 = scmp.ne.s32.totalorder %s1086_s23, 0 }
  0x63   : > { %560 = vmatprep.subr.bf16.mxu0 %v818_v0  ;;  %s820_s8 = smov [#allocation7]  }
  0x64   : > { %p726_p4 = pnand %p725_p11, %p1095_p13  ;;  %s728_s6 = sshll.u32 %s820_s8, 4  ;;  %s729_s6 = int_to_ptr.vmem [resolvable:$false] %s728_s6 }
  0x65   : > { %s730_s28 = scalar_lea.vmem %s729_s6, 512  ;;  %p731_p10 = scmp.lt.s32.totalorder %s1024_s4, %s729_s6 }
  0x66   : > { %561 = vmatpush3.bf16.msra.mxu0 %v660_v3  ;;  %p727_p1 = pneg %p726_p4  ;;  %p732_p3 = scmp.lt.s32.totalorder %s730_s28, %s724_s26 }
  0x67   : > { %562 = vmatprep.subr.bf16.mxu0 %v818_v0 }
  0x68   : > { %p733_p6 = por %p732_p3, %p731_p10 }
  0x6a   : > { %563 = vmatpush3.bf16.msra.mxu0 %v661_v4  ;;  %p734_p0 = pnand %p733_p6, %p727_p1 }
  0x6b   : > { %564 = vmatprep.subr.bf16.mxu0 %v818_v0 }
  0x6e   : > { %565 = vmatpush3.bf16.msra.mxu0 %v662_v5 }
  0x6f   : > { %566 = vmatprep.subr.bf16.mxu0 %v818_v0 }
  0x72   : > { %567 = vmatpush3.bf16.msra.mxu0 %v663_v6 }
  0x73   : > { %568 = vmatprep.subr.bf16.mxu0 %v818_v0 }
  0x76   : > { %569 = vmatpush3.bf16.msra.mxu0 %v664_v7 }
  0x77   : > { %570 = vmatprep.subr.bf16.mxu0 %v818_v0 }
  0x7a   : > { %571 = vmatpush3.bf16.msra.mxu0 %v665_v8 }
  0x7d   : > { %573 = vmatmul.mubr.bf16.vlgmr.msra.gmra.mrb[0].mxu0 %v268_v11 }
 0x150   : > { %v367_v12 = vpop.f32.mrb[0].mxu0 }
 0x151   : > { %v574_v14 = vpop.f32.mrb[1].mxu0  ;;  %v390_v16 = vadd.f32 %v542_v13, %v367_v12 }
 0x152   : > { %v370_v15 = vpop.f32.mrb[2].mxu0 }
 0x153   : > { %v575_v17 = vpop.f32.mrb[3].mxu0  ;;  %392 = vst [vmem:[%s250_s21] sm:$0xff] %v390_v16  ;;  %v391_v18 = vadd.f32 %v542_v13, %v370_v15 }
 0x155   : > { %393 = vst [vmem:[%s250_s21 + $0x8] sm:$0xff] %v391_v18 }
 0x156   : > { %737 = shalt.err (!%p734_p0)
}
 0x157   : > { %s738_s29 = scalar_lea.hbm %s1022_s7, 256  ;;  %s742_s25 = scalar_lea.hbm %s1076_s3, 512 }
 0x158   : > { %p739_p2 = scmp.ne.s32.totalorder %s1022_s7, %s738_s29  ;;  %p743_p5 = scmp.lt.u32.totalorder %s1022_s7, %s1076_s3 }
 0x159   : > { %p744_p9 = scmp.lt.u32.totalorder %s742_s25, %s738_s29  ;;  %p746_p11 = scmp.lt.u32.totalorder %s738_s29, %s1022_s7 }
 0x15a   : > { %p740_p7 = pnand %p739_p2, %p1095_p13 }
 0x15b   : > { %p745_p8 = por %p744_p9, %p743_p5 }
 0x15c   : > { %p741_p12 = pneg %p740_p7 }
 0x15d   : > { %p747_p4 = por %p746_p11, %p745_p8 }
 0x15f   : > { %p748_p1 = pnand %p747_p4, %p741_p12 }
 0x161   : > { %751 = shalt.err (!%p748_p1)
}
 0x162   : > { %s821_s11 = smov 128   ;;  %s822_s21 = smov 256  }
 0x163   : > { %s823_s5 = smov 8  }
 0x164   : > { %582 = dma.vmem_to_hbm [thread:$0]  (%p1095_p13), %s1024_s4, 256, %s1022_s7, %s395_s15, %s821_s11, %s822_s21, %s823_s5  }
 0x165 PF: > { %s425_s27 = sand.u32 1, %s790_s12   ;;  %p1096_p10 = scmp.ne.s32.totalorder %s1087_s24, 0 }
 0x166   : > { %p1097_p3 = scmp.ge.s32.totalorder %s810_s17, 2  ;;  %s426_s26 = scalar_lea.sflag [#allocation4], %s425_s27 }
 0x168   : > { %p593_p6 = pnand %p1097_p3, %p1096_p10 }
 0x16a   : > { %785 = dma.done.wait (!%p593_p6), %s426_s26, 256  }
 0x16b   : > { %787 = vsyncadd (!%p593_p6), %s426_s26, 4294967040  ;;  %s20_s17 = sadd.s32 1, %s810_s17   ;;  %s1098_s12 = smov %s794_s13 }
 0x16c   : > { %p17_p0 = scmp.ge.s32.totalorder %s20_s17, 4   ;;  %s1099_s13 = smov %s798_s14 }
 0x16d   : > { %s1100_s14 = smov %s964_s19  ;;  %s1101_s15 = smov %s806_s16 }
 0x16e   : > { %s1102_s16 = smov %s1104_s30  ;;  %19 = sbr.rel (!%p17_p0) target bundleno = 7 (0x7), region = 94 }
 0x175   :  { %431 = vsyncpa [#allocation3], 1 }
 0x176   :  { %433 = vsyncpa [#allocation3 + $0x1], 1 }
 0x177   :  { %434 = vsyncpa [#allocation6], 1 }
 0x178   :  { %436 = vsyncpa [#allocation6 + $0x1], 1 }
 0x179   :  { %437 = vsyncpa [#allocation4], 1 }
 0x17a   :  { %439 = vsyncpa [#allocation4 + $0x1], 1 }

</bundles_post_ra>
